<compile_context>
chip_gen: v6e
topology: v6e:2x2x1
jax: 0.10.0
libtpu: 0.0.40
codegen_flags: <defaults>
</compile_context>

<pallas_src>
import functools

import jax
import jax.numpy as jnp
from jax.experimental import pallas as pl
from jax.experimental.pallas import tpu as pltpu


def _round_up(x, m):
    return (x + m - 1) // m * m


def _vmem_capacity_bytes():
    try:
        return int(pltpu.get_tpu_info().vmem_capacity_bytes)
    except Exception:
        return 64 * 1024 * 1024  # conservative: assume v7x


def _vmem_limit_bytes():
    # Never request more scoped VMEM than the smallest generation can give.
    return min(48 * 1024 * 1024, (3 * _vmem_capacity_bytes()) // 4)


def _tile_caps():
    # Generation-aware tile caps (double-buffered bf16 x/w tiles + f32 output
    # must fit comfortably in scoped VMEM).
    if _vmem_capacity_bytes() >= 128 * 1024 * 1024:      # v5e / v6e
        return dict(tm=512, tn=1024, tk=2048)
    return dict(tm=512, tn=512, tk=1024)                 # v7x (64 MiB)


def _largest_tile(dim_padded, cap):
    """Largest multiple of 128 that divides dim_padded and is <= cap."""
    best = 128
    t = 128
    while t <= min(dim_padded, cap):
        if dim_padded % t == 0:
            best = t
        t += 128
    return best


# --------------------------- fused linear+bn+relu ----------------------------
def _linear_bn_relu_kernel(x_ref, w_ref, v_ref, o_ref, *,
                           eps, with_norm, use_batch_stats):
    k = pl.program_id(2)

    @pl.when(k == 0)
    def _():
        o_ref[...] = jnp.zeros_like(o_ref)

    # bf16 x bf16 operands, f32 accumulation on the MXU, directly into the
    # resident f32 output block (no extra VMEM scratch).
    o_ref[...] += jnp.dot(x_ref[...], w_ref[...],
                          preferred_element_type=jnp.float32)

    @pl.when(k == pl.num_programs(2) - 1)
    def _():
        y = o_ref[...] + v_ref[0:1, :]                       # bias
        if with_norm:
            if use_batch_stats:
                # nn.BatchNorm1d training mode: biased per-feature batch stats
                # (requires the full batch inside this tile).
                mean = jnp.mean(y, axis=0, keepdims=True)
                diff = y - mean
                var = jnp.mean(diff * diff, axis=0, keepdims=True)
            else:
                mean = v_ref[3:4, :]                         # running_mean
                var = v_ref[4:5, :]                          # running_var
            y = (y - mean) * jax.lax.rsqrt(var + eps) * v_ref[1:2, :] \
                + v_ref[2:3, :]                              # gamma / beta
        o_ref[...] = jnp.maximum(y, 0.0)


# ----------------------------- parameter prep --------------------------------
def prepare_params(params, *, with_norm=True, training=True):
    """One-time prep: pad + cast weights to bf16, pack per-feature vectors.

    Returns (w_bf16_padded, packed_vectors, static_cfg)."""
    w = params["w"]                              # (K, N) = (in, out)
    K, N = w.shape
    caps = _tile_caps()
    n_pad = _round_up(N, 128)
    k_pad = _round_up(K, 128)
    tn = _largest_tile(n_pad, caps["tn"])
    tk = _largest_tile(k_pad, caps["tk"])

    w_p = w.astype(jnp.bfloat16)
    if k_pad != K or n_pad != N:
        w_p = jnp.pad(w_p, ((0, k_pad - K), (0, n_pad - N)))

    def vec(name, default, pad_value):
        v = params.get(name)
        if v is None:
            v = jnp.full((N,), default, jnp.float32)
        v = v.astype(jnp.float32)
        if n_pad != N:
            v = jnp.pad(v, (0, n_pad - N), constant_values=pad_value)
        return v

    rows = [vec("b", 0.0, 0.0)]
    if with_norm:
        rows += [vec("gamma", 1.0, 0.0), vec("beta", 0.0, 0.0)]
        if not training:
            # pad running_var with 1.0 so padded columns never hit rsqrt(eps)
            rows += [vec("running_mean", 0.0, 0.0),
                     vec("running_var", 1.0, 1.0)]
    vecs = jnp.stack(rows, axis=0)               # (R, n_pad)

    cfg = dict(N=N, K=K, n_pad=n_pad, k_pad=k_pad, tn=tn, tk=tk,
               tm_cap=caps["tm"], with_norm=with_norm, training=training)
    return w_p, vecs, cfg


# ------------------------------- forward pass --------------------------------
def mlp_module_forward(x, w_p, vecs, *, cfg, eps=1e-5):
    """ReLU(BatchNorm1d(Linear(x))) -- matches MLPModule.forward.

    x: (M, K) f32. w_p/vecs/cfg come from prepare_params()."""
    M, K = x.shape
    assert K == cfg["K"], "input feature dim mismatch"
    N, n_pad, k_pad = cfg["N"], cfg["n_pad"], cfg["k_pad"]
    tn, tk = cfg["tn"], cfg["tk"]
    with_norm, training = cfg["with_norm"], cfg["training"]

    # M tiling: BN-training statistics need the full batch in one tile.
    if with_norm and training:
        tm, m_pad = M, M
    elif M <= cfg["tm_cap"]:
        tm, m_pad = M, M
    else:
        tm = cfg["tm_cap"]
        m_pad = _round_up(M, tm)

    x_p = x.astype(jnp.bfloat16)
    if m_pad != M or k_pad != K:
        x_p = jnp.pad(x_p, ((0, m_pad - M), (0, k_pad - K)))

    R = vecs.shape[0]
    kernel = functools.partial(_linear_bn_relu_kernel, eps=eps,
                               with_norm=with_norm, use_batch_stats=training)

    out = pl.pallas_call(
        kernel,
        out_shape=jax.ShapeDtypeStruct((m_pad, n_pad), jnp.float32),
        grid_spec=pltpu.PrefetchScalarGridSpec(
            num_scalar_prefetch=0,
            grid=(m_pad // tm, n_pad // tn, k_pad // tk),
            in_specs=[
                pl.BlockSpec((tm, tk), lambda i, j, k: (i, k)),   # activations
                pl.BlockSpec((tk, tn), lambda i, j, k: (k, j)),   # bf16 weights
                pl.BlockSpec((R, tn), lambda i, j, k: (0, j)),    # packed vectors
            ],
            out_specs=pl.BlockSpec((tm, tn), lambda i, j, k: (i, j)),
        ),
        compiler_params=pltpu.CompilerParams(
            dimension_semantics=("parallel", "parallel", "arbitrary"),
            vmem_limit_bytes=_vmem_limit_bytes(),
        ),
    )(x_p, w_p, vecs)

    if m_pad != M or n_pad != N:
        out = out[:M, :N]
    return out


# ----------------------------- parameter setup -------------------------------
def init_params(key, in_params, out_params, with_norm=True):
    kw, kb = jax.random.split(key)
    # nn.Linear default init: U(-1/sqrt(in), 1/sqrt(in)) for weight and bias.
    bound = 1.0 / (in_params ** 0.5)
    p = {
        "w": jax.random.uniform(kw, (in_params, out_params), jnp.float32,
                                -bound, bound),
        "b": jax.random.uniform(kb, (out_params,), jnp.float32, -bound, bound),
    }
    if with_norm:
        p["gamma"] = jnp.ones((out_params,), jnp.float32)
        p["beta"] = jnp.zeros((out_params,), jnp.float32)
        p["running_mean"] = jnp.zeros((out_params,), jnp.float32)
        p["running_var"] = jnp.ones((out_params,), jnp.float32)
    return p


if __name__ == "__main__":
    key = jax.random.PRNGKey(0)
    pkey, xkey = jax.random.split(key)

    # Small but exercises K-accumulation (multiple K tiles on all generations)
    # and the divisor-based (non-over-padded) N tiling.
    batch, in_params, out_params = 8, 4096, 768
    params = init_params(pkey, in_params, out_params, with_norm=True)
    x = jax.random.normal(xkey, (batch, in_params), jnp.float32)

    # One-time weight prep (bf16 cast + pad + vector packing), hoisted out of
    # the per-call path.
    w_p, vecs, cfg = prepare_params(params, with_norm=True, training=True)
    fwd = jax.jit(functools.partial(mlp_module_forward, cfg=cfg))
    out = jax.block_until_ready(fwd(x, w_p, vecs))

    # Pure-JAX reference using the same bf16-rounded operands (so only MXU
    # accumulation-order differences remain).
    eps = 1e-5
    xr = x.astype(jnp.bfloat16).astype(jnp.float32)
    wr = params["w"].astype(jnp.bfloat16).astype(jnp.float32)
    y = xr @ wr + params["b"][None, :]
    mean = jnp.mean(y, axis=0, keepdims=True)
    var = jnp.mean((y - mean) ** 2, axis=0, keepdims=True)
    y = (y - mean) * jax.lax.rsqrt(var + eps) * params["gamma"][None, :] \
        + params["beta"][None, :]
    ref = jnp.maximum(y, 0.0)

    assert out.shape == (batch, out_params) and out.dtype == jnp.float32
    assert bool(jnp.all(jnp.isfinite(out)))
    assert bool(jnp.all(out >= 0.0))           # ReLU output is non-negative
    max_err = float(jnp.max(jnp.abs(out - ref)))
    assert max_err < 5e-2, f"max abs error vs reference: {max_err}"
    print("KERNEL_OK")
</pallas_src>

<mosaic_0001>
module attributes {stable_mosaic.version = 11 : i64} {
  func.func @_linear_bn_relu_kernel(%arg0: i32, %arg1: i32, %arg2: i32, %arg3: memref<8x1024xbf16, #tpu.memory_space<vmem>>, %arg4: memref<1024x384xbf16, #tpu.memory_space<vmem>>, %arg5: memref<3x384xf32, #tpu.memory_space<vmem>>, %arg6: memref<8x384xf32, #tpu.memory_space<vmem>>) attributes {dimension_semantics = [#tpu.dimension_semantics<parallel>, #tpu.dimension_semantics<parallel>, #tpu.dimension_semantics<arbitrary>], iteration_bounds = array<i64: 1, 2, 4>, scalar_prefetch = 0 : i64, scratch_operands = 0 : i64, tpu.core_type = #tpu.core_type<tc>, window_params = [{transform_indices = @transform_0, window_bounds = array<i64: 8, 1024>}, {transform_indices = @transform_1, window_bounds = array<i64: 1024, 384>}, {transform_indices = @transform_2, window_bounds = array<i64: 3, 384>}, {transform_indices = @transform_3, window_bounds = array<i64: 8, 384>}]} {
    %c0_i32 = arith.constant 0 : i32
    %0 = arith.cmpi eq, %arg2, %c0_i32 : i32
    %1 = arith.extui %0 : i1 to i32
    %c0_i32_0 = arith.constant 0 : i32
    %2 = arith.cmpi ne, %1, %c0_i32_0 : i32
    scf.if %2 {
      %cst_9 = arith.constant 0.000000e+00 : f32
      %12 = vector.broadcast %cst_9 : f32 to vector<8x384xf32>
      %c0_10 = arith.constant 0 : index
      %c0_11 = arith.constant 0 : index
      %13 = vector.load %arg6[%c0_10, %c0_11] : memref<8x384xf32, #tpu.memory_space<vmem>>, vector<8x384xf32>
      tpu.vector_store %arg6[%c0_10, %c0_11], %12 {strides = array<i32>} : memref<8x384xf32, #tpu.memory_space<vmem>>, vector<8x384xf32>,
    } else {
    }
    %c0 = arith.constant 0 : index
    %c0_1 = arith.constant 0 : index
    %3 = vector.load %arg6[%c0, %c0_1] : memref<8x384xf32, #tpu.memory_space<vmem>>, vector<8x384xf32>
    %c0_2 = arith.constant 0 : index
    %c0_3 = arith.constant 0 : index
    %4 = vector.load %arg3[%c0_2, %c0_3] : memref<8x1024xbf16, #tpu.memory_space<vmem>>, vector<8x1024xbf16>
    %c0_4 = arith.constant 0 : index
    %c0_5 = arith.constant 0 : index
    %5 = vector.load %arg4[%c0_4, %c0_5] : memref<1024x384xbf16, #tpu.memory_space<vmem>>, vector<1024x384xbf16>
    %cst = arith.constant dense<0.000000e+00> : vector<8x384xf32>
    %6 = tpu.matmul %4, %5, %cst {dimension_numbers = #tpu.dot_dimension_numbers<[1], [0], [0], [1], [0, 0, 1, 1], [], []>} : vector<8x1024xbf16>, vector<1024x384xbf16>, vector<8x384xf32> -> vector<8x384xf32>
    %7 = arith.addf %3, %6 : vector<8x384xf32>
    %c0_6 = arith.constant 0 : index
    %c0_7 = arith.constant 0 : index
    %8 = vector.load %arg6[%c0_6, %c0_7] : memref<8x384xf32, #tpu.memory_space<vmem>>, vector<8x384xf32>
    tpu.vector_store %arg6[%c0_6, %c0_7], %7 {strides = array<i32>} : memref<8x384xf32, #tpu.memory_space<vmem>>, vector<8x384xf32>,
    %c3_i32 = arith.constant 3 : i32
    %9 = arith.cmpi eq, %arg2, %c3_i32 : i32
    %10 = arith.extui %9 : i1 to i32
    %c0_i32_8 = arith.constant 0 : i32
    %11 = arith.cmpi ne, %10, %c0_i32_8 : i32
    scf.if %11 {
      %c0_9 = arith.constant 0 : index
      %c0_10 = arith.constant 0 : index
      %12 = vector.load %arg6[%c0_9, %c0_10] : memref<8x384xf32, #tpu.memory_space<vmem>>, vector<8x384xf32>
      %c0_11 = arith.constant 0 : index
      %c0_12 = arith.constant 0 : index
      %13 = vector.load %arg5[%c0_11, %c0_12] : memref<3x384xf32, #tpu.memory_space<vmem>>, vector<1x384xf32>
      %14 = vector.broadcast %13 : vector<1x384xf32> to vector<8x384xf32>
      %15 = arith.addf %12, %14 : vector<8x384xf32>
      %cst_13 = arith.constant dense<0.000000e+00> : vector<384xf32>
      %16 = vector.multi_reduction <add>, %15, %cst_13 [0] : vector<8x384xf32> to vector<384xf32>
      %17 = vector.shape_cast %16 : vector<384xf32> to vector<1x384xf32>
      %cst_14 = arith.constant 8.000000e+00 : f32
      %18 = vector.broadcast %cst_14 : f32 to vector<1x384xf32>
      %19 = arith.divf %17, %18 : vector<1x384xf32>
      %20 = vector.broadcast %19 : vector<1x384xf32> to vector<8x384xf32>
      %21 = arith.subf %15, %20 : vector<8x384xf32>
      %22 = arith.mulf %21, %21 : vector<8x384xf32>
      %cst_15 = arith.constant dense<0.000000e+00> : vector<384xf32>
      %23 = vector.multi_reduction <add>, %22, %cst_15 [0] : vector<8x384xf32> to vector<384xf32>
      %24 = vector.shape_cast %23 : vector<384xf32> to vector<1x384xf32>
      %cst_16 = arith.constant 8.000000e+00 : f32
      %25 = vector.broadcast %cst_16 : f32 to vector<1x384xf32>
      %26 = arith.divf %24, %25 : vector<1x384xf32>
      %27 = vector.broadcast %19 : vector<1x384xf32> to vector<8x384xf32>
      %28 = arith.subf %15, %27 : vector<8x384xf32>
      %cst_17 = arith.constant 9.99999974E-6 : f32
      %29 = vector.broadcast %cst_17 : f32 to vector<1x384xf32>
      %30 = arith.addf %26, %29 : vector<1x384xf32>
      %31 = math.rsqrt %30 : vector<1x384xf32>
      %32 = vector.broadcast %31 : vector<1x384xf32> to vector<8x384xf32>
      %33 = arith.mulf %28, %32 : vector<8x384xf32>
      %c1 = arith.constant 1 : index
      %c0_18 = arith.constant 0 : index
      %34 = vector.load %arg5[%c1, %c0_18] : memref<3x384xf32, #tpu.memory_space<vmem>>, vector<1x384xf32>
      %35 = vector.broadcast %34 : vector<1x384xf32> to vector<8x384xf32>
      %36 = arith.mulf %33, %35 : vector<8x384xf32>
      %c2 = arith.constant 2 : index
      %c0_19 = arith.constant 0 : index
      %37 = vector.load %arg5[%c2, %c0_19] : memref<3x384xf32, #tpu.memory_space<vmem>>, vector<1x384xf32>
      %38 = vector.broadcast %37 : vector<1x384xf32> to vector<8x384xf32>
      %39 = arith.addf %36, %38 : vector<8x384xf32>
      %cst_20 = arith.constant 0.000000e+00 : f32
      %40 = vector.broadcast %cst_20 : f32 to vector<8x384xf32>
      %41 = arith.maximumf %39, %40 : vector<8x384xf32>
      %c0_21 = arith.constant 0 : index
      %c0_22 = arith.constant 0 : index
      %42 = vector.load %arg6[%c0_21, %c0_22] : memref<8x384xf32, #tpu.memory_space<vmem>>, vector<8x384xf32>
      tpu.vector_store %arg6[%c0_21, %c0_22], %41 {strides = array<i32>} : memref<8x384xf32, #tpu.memory_space<vmem>>, vector<8x384xf32>,
    } else {
    }
    return
  }
  func.func @transform_0(%arg0: i32, %arg1: i32, %arg2: i32) -> (i32, i32) {
    %c0_i32 = arith.constant 0 : i32
    return %arg0, %arg2 : i32, i32
  }
  func.func @transform_1(%arg0: i32, %arg1: i32, %arg2: i32) -> (i32, i32) {
    %c0_i32 = arith.constant 0 : i32
    return %arg2, %arg1 : i32, i32
  }
  func.func @transform_2(%arg0: i32, %arg1: i32, %arg2: i32) -> (i32, i32) {
    %c0_i32 = arith.constant 0 : i32
    %c0_i32_0 = arith.constant 0 : i32
    return %c0_i32, %arg1 : i32, i32
  }
  func.func @transform_3(%arg0: i32, %arg1: i32, %arg2: i32) -> (i32, i32) {
    %c0_i32 = arith.constant 0 : i32
    return %arg0, %arg1 : i32, i32
  }
}

</mosaic_0001>

<bundles_post_ra>
// kernel: mlp_module_forward.1
= control target key start
LH: loop header
LB: loop body
LE: loop exit
PB: predicated region body
PF: predicated region fallthrough
CT: control target
= control target key end

     0   :  { %s3660_s0 = inlined_call_operand.vmem [shape: bf16[8,4096], index: 0, kind: input, shape index: {}]   ;;  %s3661_s1 = inlined_call_operand.hbm [shape: bf16[4096,768], index: 1, kind: input, shape index: {}]   ;;  %s3662_s2 = inlined_call_operand.hbm [shape: f32[3,768], index: 2, kind: input, shape index: {}]   ;;  %s3663_s3 = inlined_call_operand.hbm [shape: f32[8,768], index: 3, kind: output, shape index: {}]  }
   0x1   :  { %3668 = sst [smem:[#allocation15_spill]] %s3661_s1 }
   0x2   :  { %3669 = sst [smem:[#allocation16_spill]] %s3663_s3 }
   0x3   :  { %8 = vsyncpa [#allocation3], 0 }
   0x4   :  { %10 = vsyncpa [#allocation3 + $0x1], 0 }
   0x5   :  { %11 = vsyncpa [#allocation6], 0 }
   0x6   :  { %13 = vsyncpa [#allocation6 + $0x1], 0 }
   0x7   :  { %14 = vsyncpa [#allocation4], 0 }
   0x8   :  { %16 = vsyncpa [#allocation4 + $0x1], 0  ;;  %s3131_s12 = smov 0   ;;  %s3133_s13 = smov 0  }
   0x9   :  { %s3135_s14 = smov 0   ;;  %s3137_s15 = smov 0  }
   0xa   :  { %s3139_s16 = smov 0   ;;  %s3141_s17 = smov 0  }
   0xb   :  { %s3143_s18 = smov 0   ;;  %s3145_s19 = smov 0  }
   0xc   :  { %s3147_s20 = smov 0   ;;  %s3149_s21 = smov 0  }
   0xd   :  { %s3151_s22 = smov 0  }
   0xe LB: > { %3670 = sst [smem:[#allocation11_spill]] %s3090_s19  ;;  %s34_s23 = sadd.s32 1, %s3094_s20  ;;  %s3102_s22 = sphi %s3151_s22, %s22_s22   ;;  %s3098_s21 = sphi %s3149_s21, %s3690_s21   ;;  %s3094_s20 = sphi %s3147_s20, %s3698_s20   ;;  %s3090_s19 = sphi %s3145_s19, %s3688_s19   ;;  %s3086_s18 = sphi %s3143_s18, %s3697_s18   ;;  %s3082_s17 = sphi %s3141_s17, %s3696_s17   ;;  %s3078_s16 = sphi %s3139_s16, %s3695_s16   ;;  %s3074_s15 = sphi %s3137_s15, %s3694_s15   ;;  %s3070_s14 = sphi %s3135_s14, %s3693_s14   ;;  %s3066_s13 = sphi %s3133_s13, %s3692_s13   ;;  %s3062_s12 = sphi %s3131_s12, %s3691_s12  }
   0xf   : > { %3671 = sst [smem:[#allocation12_spill]] %s3098_s21  ;;  %p3188_p0 = scmp.ge.s32.totalorder %s34_s23, 4 }
  0x10   : > { %p85_p1 = scmp.ne.s32.totalorder %s3082_s17, %s3078_s16  ;;  %p86_p2 = scmp.eq.s32.totalorder %s3102_s22, 0 }
  0x11   : > { %s3700_s23 = smov (%p3188_p0, %s34_s23), 0  ;;  %p2558_p4 = scmp.lt.s32.totalorder %s3102_s22, 8 }
  0x12   : > { %3673 = sst [smem:[#allocation13_spill]] %s3700_s23  ;;  %p87_p3 = por %p86_p2, %p85_p1 }
  0x13   : > { %s182_s27 = sand.u32 1, %s3082_s17   ;;  %s188_s29 = smul.u32 3, %s3098_s21 }
  0x14   : > { %s2535_s28 = smul.u32 1536, %s182_s27  ;;  %p3208_p5 = pnand %p2558_p4, %p87_p3 }
  0x15   : > { %s2536_s4 = smul.u32 768, %s3094_s20  ;;  %s3675_s1 = sld [smem:[#allocation15_spill]] }
  0x16   : > { %s186_s5 = scalar_lea.vmem [#allocation2], %s2535_s28  ;;  %p2235_p6 = scmp.ge.s32.totalorder %s3102_s22, 1 }
  0x17   : > { %s196_s6 = sshll.u32 %s186_s5, 4  ;;  %s193_s7 = sadd.s32 %s2536_s4, %s188_s29  ;;  %s197_s6 = int_to_ptr.vmem [resolvable:$true] %s196_s6 }
  0x18   : > { %s2233_s8 = sshll.u32 %s193_s7, 6  ;;  %s183_s24 = scalar_lea.sflag [#allocation3], %s182_s27 }
  0x19   : > { %p2924_p7 = pneg %p3208_p5  ;;  %s2935_s26 = scalar_lea.vmem %s197_s6, 24576 }
  0x1a   : > { %p2936_p8 = scmp.ne.s32.totalorder %s197_s6, %s2935_s26  ;;  %s3104_s3 = smov [#allocation2]  }
  0x1b   : > { %s195_s11 = scalar_lea.hbm %s3675_s1, %s2233_s8  ;;  %s2940_s19 = sshll.u32 %s3104_s3, 4  ;;  %s2941_s19 = int_to_ptr.vmem [resolvable:$false] %s2940_s19 }
  0x1c   : > { %p2938_p9 = pnand %p2936_p8, %p2924_p7  ;;  %s2942_s28 = scalar_lea.vmem %s2941_s19, 49152 }
  0x1d   : > { %p2943_p11 = scmp.lt.s32.totalorder %s197_s6, %s2941_s19  ;;  %p2944_p12 = scmp.lt.s32.totalorder %s2942_s28, %s2935_s26 }
  0x1e   : > { %p2939_p10 = pneg %p2938_p9 }
  0x1f   : > { %p2945_p13 = por %p2944_p12, %p2943_p11 }
  0x21   : > { %p2946_p1 = pnand %p2945_p13, %p2939_p10 }
  0x23   : > { %2949 = shalt.err (!%p2946_p1)
}
  0x24   : > { %s3105_s29 = smov 384   ;;  %s3106_s3 = smov 192  }
  0x25   : > { %s3107_s19 = smov 12   ;;  %p223_p3 = scmp.lt.s32.totalorder %s3102_s22, 9 }
  0x26   : > { %2550 = dma.hbm_to_vmem [thread:$0]  (!%p3208_p5), %s195_s11, 24576, %s197_s6, %s183_s24, %s3105_s29, %s3106_s3, %s3107_s19  }
  0x27   : > { %p3224_p7 = pnand %p2235_p6, %p223_p3  ;;  %s2227_s27 = sadd.s32 4294967295, %s3102_s22  }
  0x28   : > { %s2228_s4 = sadd.s32 4294967294, %s3102_s22   ;;  %s37_s5 = sadd.s32 1, %s3098_s21 }
  0x29   : > { %p91_p8 = scmp.ne.s32.totalorder %s3078_s16, %s3074_s15  ;;  %s3702_s5 = smov (!%p3188_p0, %s37_s5), %s3098_s21 }
  0x2a   : > { %p92_p9 = scmp.eq.s32.totalorder %s2227_s27, 0  ;;  %s104_s24 = sadd.s32 1, %s3070_s14 }
  0x2b   : > { %p39_p5 = scmp.ge.s32.totalorder %s3702_s5, 2  ;;  %p111_p10 = scmp.ne.s32.totalorder %s3070_s14, %s3066_s13 }
  0x2c   : > { %p3239_p6 = por %p92_p9, %p91_p8  ;;  %p117_p11 = scmp.ne.s32.totalorder %s3066_s13, %s3062_s12 }
  0x2d   : > { %s3704_s5 = smov (%p39_p5, %s3702_s5), 0  ;;  %p3249_p0 = por %p111_p10, %p86_p2 }
  0x2e   : > { %3678 = sst [smem:[#allocation14_spill]] %s3704_s5  ;;  %p3256_p12 = por %p117_p11, %p92_p9 }
  0x2f   : > { %s74_s6 = ssub.s32 %s3098_s21, %s3704_s5  ;;  %p143_p13 = scmp.eq.s32.totalorder %s2227_s27, 7 }
  0x30   : > { %s3681_s7 = ssub.s32 %s3094_s20, %s3700_s23  ;;  %p102_p1 = scmp.eq.s32.totalorder %s74_s6, 0 }
  0x31   : > { %s75_s8 = sor.u32 %s74_s6, %s3681_s7  ;;  %p3265_p8 = por %p143_p13, %p111_p10 }
  0x32   : > { %p76_p3 = scmp.eq.s32.totalorder %s75_s8, 0  ;;  %s3683_s11 = sadd.s32 1, %s3082_s17 }
  0x33   : > { %s3270_s10 = scalar_select %p102_p1, %s3070_s14, %s104_s24  }
  0x34   : > { %s3275_s28 = scalar_select %p76_p3, %s3082_s17, %s3683_s11  }
  0x35   : > { %p149_p2 = scmp.eq.s32.totalorder %s2228_s4, 7  ;;  %s206_s29 = sand.u32 1, %s3070_s14  }
  0x36   : > { %s2537_s3 = smul.u32 12, %s206_s29  ;;  %p3290_p5 = pnand %p2558_p4, %p3249_p0 }
  0x37   : > { %p3281_p9 = por %p149_p2, %p117_p11  ;;  %s2445_s27 = smul.u32 192, %s3098_s21 }
  0x38   : > { %s210_s4 = scalar_lea.vmem [#allocation5], %s2537_s3  ;;  %s207_s1 = scalar_lea.sflag [#allocation6], %s206_s29 }
  0x39   : > { %s216_s8 = scalar_lea.hbm %s3662_s2, %s2445_s27  ;;  %s218_s11 = sshll.u32 %s210_s4, 4  ;;  %s219_s11 = int_to_ptr.vmem [resolvable:$true] %s218_s11 }
  0x3a   : > { %p2952_p10 = pneg %p3290_p5  ;;  %s2963_s5 = scalar_lea.vmem %s219_s11, 192 }
  0x3b   : > { %p2964_p11 = scmp.ne.s32.totalorder %s219_s11, %s2963_s5  ;;  %s3108_s15 = smov [#allocation5]  }
  0x3c   : > { %s2968_s23 = sshll.u32 %s3108_s15, 4  ;;  %s2969_s23 = int_to_ptr.vmem [resolvable:$false] %s2968_s23 }
  0x3d   : > { %p2966_p13 = pnand %p2964_p11, %p2952_p10  ;;  %s2970_s21 = scalar_lea.vmem %s2969_s23, 384 }
  0x3e   : > { %p2971_p4 = scmp.lt.s32.totalorder %s219_s11, %s2969_s23  ;;  %p2972_p0 = scmp.lt.s32.totalorder %s2970_s21, %s2963_s5 }
  0x3f   : > { %p2967_p1 = pneg %p2966_p13 }
  0x40   : > { %p2973_p3 = por %p2972_p0, %p2971_p4 }
  0x42   : > { %p2974_p2 = pnand %p2973_p3, %p2967_p1 }
  0x44   : > { %2977 = shalt.err (!%p2974_p2)
}
  0x45   : > { %2553 = dma.hbm_to_vmem [thread:$0]  (!%p3290_p5), %s216_s8, 192, %s219_s11, %s207_s1  }
  0x46   : > { %227 = sbr.rel (%p3224_p7) target bundleno = 581 (0x245), region = 32  ;;  %s229_s29 = sand.u32 (!%p3224_p7), 1, %s3078_s16  }
  0x47   : > { %s2538_s3 = smul.u32 (!%p3224_p7), 1536, %s229_s29  ;;  %s230_s27 = scalar_lea.sflag (!%p3224_p7), [#allocation3], %s229_s29 }
  0x49   : > { %s3304_s24 = scalar_lea.vmem (!%p3224_p7), [#allocation2], %s2538_s3 }
  0x4b   : > { %3049 = dma.done.wait (%p3239_p6), %s230_s27, 24576  }
  0x4c   : > { %3051 = vsyncadd (%p3239_p6), %s230_s27, 4294942720  ;;  %s3311_s21 = sand.u32 1, %s3066_s13  }
  0x4d   : > { %s2539_s1 = smul.u32 12, %s3311_s21  ;;  %s239_s23 = scalar_lea.sflag [#allocation6], %s3311_s21 }
  0x4f   : > { %s3315_s26 = scalar_lea.vmem [#allocation5], %s2539_s1 }
  0x50   : > { %3053 = dma.done.wait (%p3256_p12), %s239_s23, 192  }
  0x51   : > { %3055 = vsyncadd (%p3256_p12), %s239_s23, 4294967104  ;;  %s2540_s5 = smul.u32 24, %s3311_s21  ;;  %s2236_s30 = sshll.u32 %s3086_s18, 3 }
  0x52   : > { %p282_p7 = scmp.lt.s32.totalorder %s2236_s30, 31  ;;  %p2238_p6 = scmp.ne.s32.totalorder %s3086_s18, 0 }
  0x53   : > { %s3328_s11 = scalar_lea.vmem [#allocation7], %s2540_s5 }
  0x54   : > { %s3706_s30 = smov (!%p282_p7, %s2236_s30), 31  ;;  %297 = sbr.rel (%p2238_p6) target bundleno = 92 (0x5c), region = 44 }
  0x55   : > { %s2237_s6 = sshll.u32 %s3706_s30, 2 }
  0x56   : > { %s3326_s4 = scalar_lea.vmem %s3660_s0, %s2237_s6 }
  0x59   : > { %v3109_v0 = vmov 0.0  }
  0x5a   : > { %298 = vst [vmem:[%s3328_s11] sm:$0xff] %v3109_v0  ;;  %299 = vst [vmem:[%s3328_s11 + $0x8] sm:$0xff] %v3109_v0 }
  0x5b   : > { %300 = vst [vmem:[%s3328_s11 + $0x10] sm:$0xff] %v3109_v0 }
  0x5c PF: > { %v2652_v1 = vld [vmem:[%s3304_s24 + $0xac] ss:$12 sps:$4 sm:$0xff]   ;;  %v2656_v3 = vld [vmem:[%s3304_s24 + $0xa8] ss:$12 sps:$4 sm:$0xff]   ;;  %v2662_v7 = vld [vmem:[%s3304_s24 + $0x90] ss:$12 sps:$4 sm:$0xff]  }
  0x5d   : > { %v2654_v2 = vld [vmem:[%s3304_s24 + $0x22c] ss:$12 sps:$4 sm:$0xff]   ;;  %1616 = vmatprep.subr.bf16.mxu0 %v2652_v1  ;;  %v2657_v4 = vld [vmem:[%s3304_s24 + $0x228] ss:$12 sps:$4 sm:$0xff]   ;;  %v2663_v8 = vld [vmem:[%s3304_s24 + $0x210] ss:$12 sps:$4 sm:$0xff]  }
  0x5e   : > { %1657 = vmatprep.subr.bf16.mxu1 %v2654_v2  ;;  %v2658_v5 = vld [vmem:[%s3304_s24 + $0x94] ss:$12 sps:$4 sm:$0xff]   ;;  %1617 = vmatpush1.bf16.msra.mxu0 %v2656_v3  ;;  %v2664_v9 = vld [vmem:[%s3304_s24 + $0x7c] ss:$12 sps:$4 sm:$0xff]   ;;  %v2668_v11 = vld [vmem:[%s3304_s24 + $0x78] ss:$12 sps:$4 sm:$0xff]  }
  0x5f   : > { %1658 = vmatpush1.bf16.msra.mxu1 %v2657_v4  ;;  %v2660_v6 = vld [vmem:[%s3304_s24 + $0x214] ss:$12 sps:$4 sm:$0xff]   ;;  %1618 = vmatprep.subr.bf16.mxu0 %v2658_v5  ;;  %v2666_v10 = vld [vmem:[%s3304_s24 + $0x1fc] ss:$12 sps:$4 sm:$0xff]   ;;  %v2669_v12 = vld [vmem:[%s3304_s24 + $0x1f8] ss:$12 sps:$4 sm:$0xff]  }
  0x60   : > { %1659 = vmatprep.subr.bf16.mxu1 %v2660_v6  ;;  %v2670_v13 = vld [vmem:[%s3304_s24 + $0x64] ss:$12 sps:$4 sm:$0xff]   ;;  %v2674_v15 = vld [vmem:[%s3304_s24 + $0x60] ss:$12 sps:$4 sm:$0xff]   ;;  %v2680_v19 = vld [vmem:[%s3304_s24 + $0x48] ss:$12 sps:$4 sm:$0xff]  }
  0x61   : > { %v2672_v14 = vld [vmem:[%s3304_s24 + $0x1e4] ss:$12 sps:$4 sm:$0xff]   ;;  %v2675_v16 = vld [vmem:[%s3304_s24 + $0x1e0] ss:$12 sps:$4 sm:$0xff]   ;;  %v2681_v20 = vld [vmem:[%s3304_s24 + $0x1c8] ss:$12 sps:$4 sm:$0xff]  }
  0x62   : > { %1619 = vmatpush1.bf16.msra.mxu0 %v2662_v7  ;;  %v2676_v17 = vld [vmem:[%s3304_s24 + $0x4c] ss:$12 sps:$4 sm:$0xff]   ;;  %v2682_v21 = vld [vmem:[%s3304_s24 + $0x34] ss:$12 sps:$4 sm:$0xff]   ;;  %v2686_v23 = vld [vmem:[%s3304_s24 + $0x30] ss:$12 sps:$4 sm:$0xff]  }
  0x63   : > { %1660 = vmatpush1.bf16.msra.mxu1 %v2663_v8  ;;  %1620 = vmatprep.subr.bf16.mxu0 %v2664_v9  ;;  %v2678_v18 = vld [vmem:[%s3304_s24 + $0x1cc] ss:$12 sps:$4 sm:$0xff]   ;;  %v2684_v22 = vld [vmem:[%s3304_s24 + $0x1b4] ss:$12 sps:$4 sm:$0xff]   ;;  %v2687_v24 = vld [vmem:[%s3304_s24 + $0x1b0] ss:$12 sps:$4 sm:$0xff]  }
  0x64   : > { %1661 = vmatprep.subr.bf16.mxu1 %v2666_v10  ;;  %v2688_v25 = vld [vmem:[%s3304_s24 + $0x1c] ss:$12 sps:$4 sm:$0xff]   ;;  %v2692_v27 = vld [vmem:[%s3304_s24 + $0x18] ss:$12 sps:$4 sm:$0xff]   ;;  %v2698_v31 = vld [vmem:[%s3304_s24] ss:$12 sps:$4 sm:$0xff]  }
  0x65   : > { %v2690_v26 = vld [vmem:[%s3304_s24 + $0x19c] ss:$12 sps:$4 sm:$0xff]   ;;  %v2693_v28 = vld [vmem:[%s3304_s24 + $0x198] ss:$12 sps:$4 sm:$0xff]   ;;  %v2699_v32 = vld [vmem:[%s3304_s24 + $0x180] ss:$12 sps:$4 sm:$0xff]  }
  0x66   : > { %1621 = vmatpush1.bf16.msra.mxu0 %v2668_v11  ;;  %v2694_v29 = vld [vmem:[%s3304_s24 + $0x4] ss:$12 sps:$4 sm:$0xff]   ;;  %v2700_v33 = vld [vmem:[%s3304_s24 + $0x16c] ss:$12 sps:$4 sm:$0xff]   ;;  %v2704_v35 = vld [vmem:[%s3304_s24 + $0x168] ss:$12 sps:$4 sm:$0xff]  }
  0x67   : > { %1662 = vmatpush1.bf16.msra.mxu1 %v2669_v12  ;;  %1622 = vmatprep.subr.bf16.mxu0 %v2670_v13  ;;  %v2696_v30 = vld [vmem:[%s3304_s24 + $0x184] ss:$12 sps:$4 sm:$0xff]   ;;  %v2702_v34 = vld [vmem:[%s3304_s24 + $0x2ec] ss:$12 sps:$4 sm:$0xff]   ;;  %v2705_v36 = vld [vmem:[%s3304_s24 + $0x2e8] ss:$12 sps:$4 sm:$0xff]  }
  0x68   : > { %1663 = vmatprep.subr.bf16.mxu1 %v2672_v14  ;;  %v2706_v37 = vld [vmem:[%s3304_s24 + $0x154] ss:$12 sps:$4 sm:$0xff]   ;;  %v2710_v39 = vld [vmem:[%s3304_s24 + $0x150] ss:$12 sps:$4 sm:$0xff]   ;;  %v2716_v43 = vld [vmem:[%s3304_s24 + $0x138] ss:$12 sps:$4 sm:$0xff]  }
  0x69   : > { %v2708_v38 = vld [vmem:[%s3304_s24 + $0x2d4] ss:$12 sps:$4 sm:$0xff]   ;;  %v2711_v40 = vld [vmem:[%s3304_s24 + $0x2d0] ss:$12 sps:$4 sm:$0xff]   ;;  %v2717_v44 = vld [vmem:[%s3304_s24 + $0x2b8] ss:$12 sps:$4 sm:$0xff]  }
  0x6a   : > { %1623 = vmatpush1.bf16.msra.mxu0 %v2674_v15  ;;  %v2712_v41 = vld [vmem:[%s3304_s24 + $0x13c] ss:$12 sps:$4 sm:$0xff]   ;;  %v2718_v45 = vld [vmem:[%s3304_s24 + $0x124] ss:$12 sps:$4 sm:$0xff]   ;;  %v2722_v50 = vld [vmem:[%s3304_s24 + $0x120] ss:$12 sps:$4 sm:$0xff]  }
  0x6b   : > { %1664 = vmatpush1.bf16.msra.mxu1 %v2675_v16  ;;  %1624 = vmatprep.subr.bf16.mxu0 %v2676_v17  ;;  %v2714_v42 = vld [vmem:[%s3304_s24 + $0x2bc] ss:$12 sps:$4 sm:$0xff]   ;;  %v2720_v46 = vld [vmem:[%s3304_s24 + $0x2a4] ss:$12 sps:$4 sm:$0xff]   ;;  %v2723_v51 = vld [vmem:[%s3304_s24 + $0x2a0] ss:$12 sps:$4 sm:$0xff]  }
  0x6c   : > { %1665 = vmatprep.subr.bf16.mxu1 %v2678_v18  ;;  %v304_v47 = vld [vmem:[%s3326_s4] sm:$0xff]  ;;  %v305_v49 = vld [vmem:[%s3326_s4 + $0x8] sm:$0xff]  ;;  %v2734_v59 = vld [vmem:[%s3304_s24 + $0xf0] ss:$12 sps:$4 sm:$0xff]   ;;  %p2439_p12 = scmp.ne.s32.totalorder %s3086_s18, 3 }
  0x6d   : > { %v3381_v48 = vcombine.high %v304_v47, %v304_v47  ;;  %v3386_v52 = vcombine.high %v305_v49, %v305_v49  ;;  %v2724_v53 = vld [vmem:[%s3304_s24 + $0x10c] ss:$12 sps:$4 sm:$0xff]   ;;  %v2728_v55 = vld [vmem:[%s3304_s24 + $0x108] ss:$12 sps:$4 sm:$0xff]   ;;  %v2735_v60 = vld [vmem:[%s3304_s24 + $0x270] ss:$12 sps:$4 sm:$0xff]   ;;  %v3408_v7 = vcombine.low %v304_v47, %v304_v47  ;;  %v3410_v8 = vcombine.low %v305_v49, %v305_v49 }
  0x6e   : > { %1625 = vmatpush1.bf16.msra.mxu0 %v2680_v19  ;;  %v2726_v54 = vld [vmem:[%s3304_s24 + $0x28c] ss:$12 sps:$4 sm:$0xff]   ;;  %v2729_v56 = vld [vmem:[%s3304_s24 + $0x288] ss:$12 sps:$4 sm:$0xff]   ;;  %v2742_v1 = vld [vmem:[%s3304_s24 + $0xc4] ss:$12 sps:$4 sm:$0xff]  }
  0x6f   : > { %1666 = vmatpush1.bf16.msra.mxu1 %v2681_v20  ;;  %1626 = vmatprep.subr.bf16.mxu0 %v2682_v21  ;;  %v2730_v57 = vld [vmem:[%s3304_s24 + $0xf4] ss:$12 sps:$4 sm:$0xff]   ;;  %v2736_v61 = vld [vmem:[%s3304_s24 + $0xdc] ss:$12 sps:$4 sm:$0xff]   ;;  %v2740_v63 = vld [vmem:[%s3304_s24 + $0xd8] ss:$12 sps:$4 sm:$0xff]  }
  0x70   : > { %1667 = vmatprep.subr.bf16.mxu1 %v2684_v22  ;;  %1648 = vmatprep.mubr.bf16.mxu0 %v3381_v48  ;;  %v2732_v58 = vld [vmem:[%s3304_s24 + $0x274] ss:$12 sps:$4 sm:$0xff]   ;;  %v2738_v62 = vld [vmem:[%s3304_s24 + $0x25c] ss:$12 sps:$4 sm:$0xff]   ;;  %v2741_v0 = vld [vmem:[%s3304_s24 + $0x258] ss:$12 sps:$4 sm:$0xff]  }
  0x71   : > { %1689 = vmatprep.mubr.bf16.mxu1 %v3386_v52  ;;  %v2744_v2 = vld [vmem:[%s3304_s24 + $0x244] ss:$12 sps:$4 sm:$0xff]   ;;  %v2746_v3 = vld [vmem:[%s3304_s24 + $0xc0] ss:$12 sps:$4 sm:$0xff]   ;;  %v2752_v9 = vld [vmem:[%s3304_s24 + $0x3a8] ss:$12 sps:$4 sm:$0xff]  }
  0x72   : > { %1627 = vmatpush1.bf16.msra.mxu0 %v2686_v23  ;;  %v2747_v4 = vld [vmem:[%s3304_s24 + $0x240] ss:$12 sps:$4 sm:$0xff]   ;;  %v2755_v10 = vld [vmem:[%s3304_s24 + $0x528] ss:$12 sps:$4 sm:$0xff]   ;;  %v2758_v13 = vld [vmem:[%s3304_s24 + $0x390] ss:$12 sps:$4 sm:$0xff]  }
  0x73   : > { %1668 = vmatpush1.bf16.msra.mxu1 %v2687_v24  ;;  %1628 = vmatprep.subr.bf16.mxu0 %v2688_v25  ;;  %v2754_v5 = vld [vmem:[%s3304_s24 + $0x3ac] ss:$12 sps:$4 sm:$0xff]   ;;  %v2760_v11 = vld [vmem:[%s3304_s24 + $0x394] ss:$12 sps:$4 sm:$0xff]   ;;  %v2761_v14 = vld [vmem:[%s3304_s24 + $0x510] ss:$12 sps:$4 sm:$0xff]  }
  0x74   : > { %1669 = vmatprep.subr.bf16.mxu1 %v2690_v26  ;;  %v2757_v6 = vld [vmem:[%s3304_s24 + $0x52c] ss:$12 sps:$4 sm:$0xff]   ;;  %v2763_v12 = vld [vmem:[%s3304_s24 + $0x514] ss:$12 sps:$4 sm:$0xff]   ;;  %v2766_v15 = vld [vmem:[%s3304_s24 + $0x37c] ss:$12 sps:$4 sm:$0xff]  }
  0x75   : > { %v2769_v16 = vld [vmem:[%s3304_s24 + $0x4fc] ss:$12 sps:$4 sm:$0xff]   ;;  %v2764_v17 = vld [vmem:[%s3304_s24 + $0x378] ss:$12 sps:$4 sm:$0xff]   ;;  %v2770_v21 = vld [vmem:[%s3304_s24 + $0x360] ss:$12 sps:$4 sm:$0xff]  }
  0x76   : > { %1629 = vmatpush1.bf16.msra.mxu0 %v2692_v27  ;;  %v2767_v18 = vld [vmem:[%s3304_s24 + $0x4f8] ss:$12 sps:$4 sm:$0xff]   ;;  %v2773_v22 = vld [vmem:[%s3304_s24 + $0x4e0] ss:$12 sps:$4 sm:$0xff]   ;;  %v2776_v25 = vld [vmem:[%s3304_s24 + $0x348] ss:$12 sps:$4 sm:$0xff]  }
  0x77   : > { %1670 = vmatpush1.bf16.msra.mxu1 %v2693_v28  ;;  %1630 = vmatprep.subr.bf16.mxu0 %v2694_v29  ;;  %v2772_v19 = vld [vmem:[%s3304_s24 + $0x364] ss:$12 sps:$4 sm:$0xff]   ;;  %v2778_v23 = vld [vmem:[%s3304_s24 + $0x34c] ss:$12 sps:$4 sm:$0xff]   ;;  %v2779_v26 = vld [vmem:[%s3304_s24 + $0x4c8] ss:$12 sps:$4 sm:$0xff]  }
  0x78   : > { %1671 = vmatprep.subr.bf16.mxu1 %v2696_v30  ;;  %v2775_v20 = vld [vmem:[%s3304_s24 + $0x4e4] ss:$12 sps:$4 sm:$0xff]   ;;  %v2781_v24 = vld [vmem:[%s3304_s24 + $0x4cc] ss:$12 sps:$4 sm:$0xff]   ;;  %v2784_v27 = vld [vmem:[%s3304_s24 + $0x334] ss:$12 sps:$4 sm:$0xff]  }
  0x79   : > { %v2787_v28 = vld [vmem:[%s3304_s24 + $0x4b4] ss:$12 sps:$4 sm:$0xff]   ;;  %v2782_v29 = vld [vmem:[%s3304_s24 + $0x330] ss:$12 sps:$4 sm:$0xff]  }
  0x7a   : > { %1631 = vmatpush1.bf16.msra.mxu0 %v2698_v31  ;;  %v2785_v30 = vld [vmem:[%s3304_s24 + $0x4b0] ss:$12 sps:$4 sm:$0xff]   ;;  %v2808_v47 = vld [vmem:[%s3304_s24 + $0x454] ss:$12 sps:$4 sm:$0xff]  }
  0x7b   : > { %1672 = vmatpush1.bf16.msra.mxu1 %v2699_v32  ;;  %1632 = vmatprep.subr.bf16.mxu0 %v2700_v33  ;;  %v2790_v31 = vld [vmem:[%s3304_s24 + $0x31c] ss:$12 sps:$4 sm:$0xff]   ;;  %v2788_v33 = vld [vmem:[%s3304_s24 + $0x318] ss:$12 sps:$4 sm:$0xff]   ;;  %v2811_v49 = vld [vmem:[%s3304_s24 + $0x5d4] ss:$12 sps:$4 sm:$0xff]  }
  0x7c   : > { %1673 = vmatprep.subr.bf16.mxu1 %v2702_v34  ;;  %v2793_v32 = vld [vmem:[%s3304_s24 + $0x49c] ss:$12 sps:$4 sm:$0xff]   ;;  %v3440_v34 = vld [vmem:[%s3326_s4 + $0x10] sm:$0xff] }
  0x7e   : > { %1633 = vmatpush2.bf16.msra.mxu0 %v2704_v35  ;;  %v3443_v35 = vld [vmem:[%s3326_s4 + $0x18] sm:$0xff] }
  0x7f   : > { %1674 = vmatpush2.bf16.msra.mxu1 %v2705_v36  ;;  %1634 = vmatprep.subr.bf16.mxu0 %v2706_v37  ;;  %v2791_v36 = vld [vmem:[%s3304_s24 + $0x498] ss:$12 sps:$4 sm:$0xff]   ;;  %v3448_v37 = vcombine.high %v3440_v34, %v3440_v34 }
  0x80   : > { %1675 = vmatprep.subr.bf16.mxu1 %v2708_v38  ;;  %v3452_v38 = vcombine.high %v3443_v35, %v3443_v35 }
  0x82   : > { %1635 = vmatpush2.bf16.msra.mxu0 %v2710_v39  ;;  %v2796_v39 = vld [vmem:[%s3304_s24 + $0x304] ss:$12 sps:$4 sm:$0xff]  }
  0x83   : > { %1676 = vmatpush2.bf16.msra.mxu1 %v2711_v40  ;;  %1636 = vmatprep.subr.bf16.mxu0 %v2712_v41  ;;  %v2799_v40 = vld [vmem:[%s3304_s24 + $0x484] ss:$12 sps:$4 sm:$0xff]   ;;  %v2794_v41 = vld [vmem:[%s3304_s24 + $0x300] ss:$12 sps:$4 sm:$0xff]  }
  0x84   : > { %1677 = vmatprep.subr.bf16.mxu1 %v2714_v42  ;;  %v2797_v42 = vld [vmem:[%s3304_s24 + $0x480] ss:$12 sps:$4 sm:$0xff]  }
  0x86   : > { %1637 = vmatpush2.bf16.msra.mxu0 %v2716_v43  ;;  %v2802_v43 = vld [vmem:[%s3304_s24 + $0x46c] ss:$12 sps:$4 sm:$0xff]  }
  0x87   : > { %1678 = vmatpush2.bf16.msra.mxu1 %v2717_v44  ;;  %1638 = vmatprep.subr.bf16.mxu0 %v2718_v45  ;;  %v2805_v44 = vld [vmem:[%s3304_s24 + $0x5ec] ss:$12 sps:$4 sm:$0xff]   ;;  %v2800_v45 = vld [vmem:[%s3304_s24 + $0x468] ss:$12 sps:$4 sm:$0xff]  }
  0x88   : > { %1679 = vmatprep.subr.bf16.mxu1 %v2720_v46  ;;  %v2803_v46 = vld [vmem:[%s3304_s24 + $0x5e8] ss:$12 sps:$4 sm:$0xff]  }
  0x8a   : > { %1639 = vmatpush2.bf16.msra.mxu0 %v2722_v50  ;;  %v2806_v50 = vld [vmem:[%s3304_s24 + $0x450] ss:$12 sps:$4 sm:$0xff]  }
  0x8b   : > { %1680 = vmatpush2.bf16.msra.mxu1 %v2723_v51  ;;  %1640 = vmatprep.subr.bf16.mxu0 %v2724_v53  ;;  %v2809_v51 = vld [vmem:[%s3304_s24 + $0x5d0] ss:$12 sps:$4 sm:$0xff]  }
  0x8c   : > { %1681 = vmatprep.subr.bf16.mxu1 %v2726_v54  ;;  %v2814_v53 = vld [vmem:[%s3304_s24 + $0x43c] ss:$12 sps:$4 sm:$0xff]  }
  0x8d   : > { %v2817_v54 = vld [vmem:[%s3304_s24 + $0x5bc] ss:$12 sps:$4 sm:$0xff]  }
  0x8e   : > { %1641 = vmatpush2.bf16.msra.mxu0 %v2728_v55  ;;  %v2812_v55 = vld [vmem:[%s3304_s24 + $0x438] ss:$12 sps:$4 sm:$0xff]  }
  0x8f   : > { %1682 = vmatpush2.bf16.msra.mxu1 %v2729_v56  ;;  %1642 = vmatprep.subr.bf16.mxu0 %v2730_v57  ;;  %v2815_v56 = vld [vmem:[%s3304_s24 + $0x5b8] ss:$12 sps:$4 sm:$0xff]  }
  0x90   : > { %1683 = vmatprep.subr.bf16.mxu1 %v2732_v58  ;;  %v2820_v57 = vld [vmem:[%s3304_s24 + $0x424] ss:$12 sps:$4 sm:$0xff]  }
  0x91   : > { %v2823_v58 = vld [vmem:[%s3304_s24 + $0x5a4] ss:$12 sps:$4 sm:$0xff]  }
  0x92   : > { %1643 = vmatpush2.bf16.msra.mxu0 %v2734_v59  ;;  %v2818_v59 = vld [vmem:[%s3304_s24 + $0x420] ss:$12 sps:$4 sm:$0xff]  }
  0x93   : > { %1684 = vmatpush2.bf16.msra.mxu1 %v2735_v60  ;;  %1644 = vmatprep.subr.bf16.mxu0 %v2736_v61  ;;  %v2821_v60 = vld [vmem:[%s3304_s24 + $0x5a0] ss:$12 sps:$4 sm:$0xff]  }
  0x94   : > { %1685 = vmatprep.subr.bf16.mxu1 %v2738_v62  ;;  %v2826_v61 = vld [vmem:[%s3304_s24 + $0x40c] ss:$12 sps:$4 sm:$0xff]  }
  0x95   : > { %v2829_v62 = vld [vmem:[%s3304_s24 + $0x58c] ss:$12 sps:$4 sm:$0xff]  }
  0x96   : > { %1645 = vmatpush2.bf16.msra.mxu0 %v2740_v63  ;;  %v2824_v63 = vld [vmem:[%s3304_s24 + $0x408] ss:$12 sps:$4 sm:$0xff]  }
  0x97   : > { %1686 = vmatpush2.bf16.msra.mxu1 %v2741_v0  ;;  %1646 = vmatprep.subr.bf16.mxu0 %v2742_v1  ;;  %v2827_v0 = vld [vmem:[%s3304_s24 + $0x588] ss:$12 sps:$4 sm:$0xff]  }
  0x98   : > { %1687 = vmatprep.subr.bf16.mxu1 %v2744_v2  ;;  %v2832_v1 = vld [vmem:[%s3304_s24 + $0x3f4] ss:$12 sps:$4 sm:$0xff]  }
  0x99   : > { %v2835_v2 = vld [vmem:[%s3304_s24 + $0x574] ss:$12 sps:$4 sm:$0xff]  }
  0x9a   : > { %1647 = vmatpush2.bf16.msra.mxu0 %v2746_v3  ;;  %v2830_v3 = vld [vmem:[%s3304_s24 + $0x3f0] ss:$12 sps:$4 sm:$0xff]  }
  0x9b   : > { %1688 = vmatpush2.bf16.msra.mxu1 %v2747_v4  ;;  %1698 = vmatprep.subr.bf16.mxu0 %v2754_v5  ;;  %v2833_v4 = vld [vmem:[%s3304_s24 + $0x570] ss:$12 sps:$4 sm:$0xff]  }
  0x9c   : > { %1739 = vmatprep.subr.bf16.mxu1 %v2757_v6  ;;  %v2838_v5 = vld [vmem:[%s3304_s24 + $0x3dc] ss:$12 sps:$4 sm:$0xff]  }
  0x9d   : > { %1649 = vmatmul.mubr.bf16.vlgmr.msra.gmra.mxu0 %v3408_v7  ;;  %v2841_v6 = vld [vmem:[%s3304_s24 + $0x55c] ss:$12 sps:$4 sm:$0xff]  }
  0x9e   : > { %1690 = vmatmul.mubr.bf16.vlgmr.msra.gmra.mxu1 %v3410_v8  ;;  %1699 = vmatpush1.bf16.msra.mxu0 %v2752_v9  ;;  %v2836_v9 = vld [vmem:[%s3304_s24 + $0x3d8] ss:$12 sps:$4 sm:$0xff]  }
  0x9f   : > { %1740 = vmatpush1.bf16.msra.mxu1 %v2755_v10  ;;  %1700 = vmatprep.subr.bf16.mxu0 %v2760_v11  ;;  %v2839_v10 = vld [vmem:[%s3304_s24 + $0x558] ss:$12 sps:$4 sm:$0xff]  }
  0xa0   : > { %1741 = vmatprep.subr.bf16.mxu1 %v2763_v12  ;;  %1730 = vmatprep.mubr.bf16.mxu0 %v3448_v37  ;;  %v2844_v11 = vld [vmem:[%s3304_s24 + $0x3c4] ss:$12 sps:$4 sm:$0xff]  }
  0xa1   : > { %1771 = vmatprep.mubr.bf16.mxu1 %v3452_v38  ;;  %v2847_v12 = vld [vmem:[%s3304_s24 + $0x544] ss:$12 sps:$4 sm:$0xff]  }
  0xa2   : > { %1701 = vmatpush1.bf16.msra.mxu0 %v2758_v13  ;;  %v2842_v13 = vld [vmem:[%s3304_s24 + $0x3c0] ss:$12 sps:$4 sm:$0xff]  }
  0xa3   : > { %1742 = vmatpush1.bf16.msra.mxu1 %v2761_v14  ;;  %1702 = vmatprep.subr.bf16.mxu0 %v2766_v15  ;;  %v2845_v14 = vld [vmem:[%s3304_s24 + $0x540] ss:$12 sps:$4 sm:$0xff]   ;;  %v2852_v15 = vld [vmem:[%s3304_s24 + $0x170] ss:$12 sps:$4 sm:$0xff]  }
  0xa4   : > { %1743 = vmatprep.subr.bf16.mxu1 %v2769_v16  ;;  %v2853_v16 = vld [vmem:[%s3304_s24 + $0x2f0] ss:$12 sps:$4 sm:$0xff]  }
  0xa6   : > { %1703 = vmatpush1.bf16.msra.mxu0 %v2764_v17  ;;  %v2854_v17 = vld [vmem:[%s3304_s24 + $0xb0] ss:$12 sps:$4 sm:$0xff]  }
  0xa7   : > { %1744 = vmatpush1.bf16.msra.mxu1 %v2767_v18  ;;  %1704 = vmatprep.subr.bf16.mxu0 %v2772_v19  ;;  %v3497_v18 = vcombine.low %v3440_v34, %v3440_v34  ;;  %v3501_v19 = vcombine.low %v3443_v35, %v3443_v35  ;;  %v2871_v34 = vld [vmem:[%s3304_s24 + $0x1d0] ss:$12 sps:$4 sm:$0xff]   ;;  %v2872_v35 = vld [vmem:[%s3304_s24 + $0xf8] ss:$12 sps:$4 sm:$0xff]  }
  0xa8   : > { %1745 = vmatprep.subr.bf16.mxu1 %v2775_v20  ;;  %v2855_v20 = vld [vmem:[%s3304_s24 + $0x230] ss:$12 sps:$4 sm:$0xff]  }
  0xaa   : > { %1705 = vmatpush1.bf16.msra.mxu0 %v2770_v21  ;;  %v2856_v21 = vld [vmem:[%s3304_s24 + $0x158] ss:$12 sps:$4 sm:$0xff]  }
  0xab   : > { %1746 = vmatpush1.bf16.msra.mxu1 %v2773_v22  ;;  %1706 = vmatprep.subr.bf16.mxu0 %v2778_v23  ;;  %v2857_v22 = vld [vmem:[%s3304_s24 + $0x2d8] ss:$12 sps:$4 sm:$0xff]  }
  0xac   : > { %1747 = vmatprep.subr.bf16.mxu1 %v2781_v24  ;;  %v2858_v23 = vld [vmem:[%s3304_s24 + $0x98] ss:$12 sps:$4 sm:$0xff]  }
  0xad   : > { %v2859_v24 = vld [vmem:[%s3304_s24 + $0x218] ss:$12 sps:$4 sm:$0xff]  }
  0xae   : > { %1707 = vmatpush1.bf16.msra.mxu0 %v2776_v25  ;;  %v2860_v25 = vld [vmem:[%s3304_s24 + $0x140] ss:$12 sps:$4 sm:$0xff]  }
  0xaf   : > { %1748 = vmatpush1.bf16.msra.mxu1 %v2779_v26  ;;  %1708 = vmatprep.subr.bf16.mxu0 %v2784_v27  ;;  %v2861_v26 = vld [vmem:[%s3304_s24 + $0x2c0] ss:$12 sps:$4 sm:$0xff]  }
  0xb0   : > { %1749 = vmatprep.subr.bf16.mxu1 %v2787_v28  ;;  %v2862_v27 = vld [vmem:[%s3304_s24 + $0x80] ss:$12 sps:$4 sm:$0xff]  }
  0xb1   : > { %v2863_v28 = vld [vmem:[%s3304_s24 + $0x200] ss:$12 sps:$4 sm:$0xff]  }
  0xb2   : > { %1709 = vmatpush1.bf16.msra.mxu0 %v2782_v29  ;;  %v2864_v29 = vld [vmem:[%s3304_s24 + $0x128] ss:$12 sps:$4 sm:$0xff]  }
  0xb3   : > { %1750 = vmatpush1.bf16.msra.mxu1 %v2785_v30  ;;  %1710 = vmatprep.subr.bf16.mxu0 %v2790_v31  ;;  %v2865_v30 = vld [vmem:[%s3304_s24 + $0x2a8] ss:$12 sps:$4 sm:$0xff]  }
  0xb4   : > { %1751 = vmatprep.subr.bf16.mxu1 %v2793_v32  ;;  %v2866_v31 = vld [vmem:[%s3304_s24 + $0x68] ss:$12 sps:$4 sm:$0xff]  }
  0xb5   : > { %v2867_v32 = vld [vmem:[%s3304_s24 + $0x1e8] ss:$12 sps:$4 sm:$0xff]  }
  0xb6   : > { %1711 = vmatpush1.bf16.msra.mxu0 %v2788_v33  ;;  %v2870_v33 = vld [vmem:[%s3304_s24 + $0x50] ss:$12 sps:$4 sm:$0xff]  }
  0xb7   : > { %1752 = vmatpush1.bf16.msra.mxu1 %v2791_v36  ;;  %1712 = vmatprep.subr.bf16.mxu0 %v2796_v39  ;;  %v2873_v36 = vld [vmem:[%s3304_s24 + $0x278] ss:$12 sps:$4 sm:$0xff]  }
  0xb8   : > { %1753 = vmatprep.subr.bf16.mxu1 %v2799_v40  ;;  %v2874_v39 = vld [vmem:[%s3304_s24 + $0x38] ss:$12 sps:$4 sm:$0xff]  }
  0xb9   : > { %v2875_v40 = vld [vmem:[%s3304_s24 + $0x1b8] ss:$12 sps:$4 sm:$0xff]  }
  0xba   : > { %1713 = vmatpush1.bf16.msra.mxu0 %v2794_v41  ;;  %v2876_v41 = vld [vmem:[%s3304_s24 + $0xe0] ss:$12 sps:$4 sm:$0xff]  }
  0xbb   : > { %1754 = vmatpush1.bf16.msra.mxu1 %v2797_v42  ;;  %1714 = vmatprep.subr.bf16.mxu0 %v2802_v43  ;;  %v2877_v42 = vld [vmem:[%s3304_s24 + $0x260] ss:$12 sps:$4 sm:$0xff]  }
  0xbc   : > { %1755 = vmatprep.subr.bf16.mxu1 %v2805_v44  ;;  %v2878_v43 = vld [vmem:[%s3304_s24 + $0x20] ss:$12 sps:$4 sm:$0xff]  }
  0xbd   : > { %v2879_v44 = vld [vmem:[%s3304_s24 + $0x1a0] ss:$12 sps:$4 sm:$0xff]  }
  0xbe   : > { %1715 = vmatpush2.bf16.msra.mxu0 %v2800_v45  ;;  %v2880_v45 = vld [vmem:[%s3304_s24 + $0xc8] ss:$12 sps:$4 sm:$0xff]  }
  0xbf   : > { %1756 = vmatpush2.bf16.msra.mxu1 %v2803_v46  ;;  %1716 = vmatprep.subr.bf16.mxu0 %v2808_v47  ;;  %v2881_v46 = vld [vmem:[%s3304_s24 + $0x248] ss:$12 sps:$4 sm:$0xff]  }
  0xc0   : > { %1757 = vmatprep.subr.bf16.mxu1 %v2811_v49  ;;  %v2882_v47 = vld [vmem:[%s3304_s24 + $0x8] ss:$12 sps:$4 sm:$0xff]  }
  0xc1   : > { %v2883_v49 = vld [vmem:[%s3304_s24 + $0x188] ss:$12 sps:$4 sm:$0xff]  }
  0xc2   : > { %1717 = vmatpush2.bf16.msra.mxu0 %v2806_v50  ;;  %v2884_v50 = vld [vmem:[%s3304_s24 + $0x470] ss:$12 sps:$4 sm:$0xff]  }
  0xc3   : > { %1758 = vmatpush2.bf16.msra.mxu1 %v2809_v51  ;;  %1718 = vmatprep.subr.bf16.mxu0 %v2814_v53  ;;  %v2885_v51 = vld [vmem:[%s3304_s24 + $0x5f0] ss:$12 sps:$4 sm:$0xff]  }
  0xc4   : > { %1759 = vmatprep.subr.bf16.mxu1 %v2817_v54  ;;  %v2886_v53 = vld [vmem:[%s3304_s24 + $0x3b0] ss:$12 sps:$4 sm:$0xff]  }
  0xc5   : > { %v2887_v54 = vld [vmem:[%s3304_s24 + $0x530] ss:$12 sps:$4 sm:$0xff]  }
  0xc6   : > { %1719 = vmatpush2.bf16.msra.mxu0 %v2812_v55  ;;  %v2888_v55 = vld [vmem:[%s3304_s24 + $0x458] ss:$12 sps:$4 sm:$0xff]  }
  0xc7   : > { %1760 = vmatpush2.bf16.msra.mxu1 %v2815_v56  ;;  %1720 = vmatprep.subr.bf16.mxu0 %v2820_v57  ;;  %v2889_v56 = vld [vmem:[%s3304_s24 + $0x5d8] ss:$12 sps:$4 sm:$0xff]  }
  0xc8   : > { %1761 = vmatprep.subr.bf16.mxu1 %v2823_v58  ;;  %v2890_v57 = vld [vmem:[%s3304_s24 + $0x398] ss:$12 sps:$4 sm:$0xff]  }
  0xc9   : > { %v2891_v58 = vld [vmem:[%s3304_s24 + $0x518] ss:$12 sps:$4 sm:$0xff]  }
  0xca   : > { %1721 = vmatpush2.bf16.msra.mxu0 %v2818_v59  ;;  %v2892_v59 = vld [vmem:[%s3304_s24 + $0x440] ss:$12 sps:$4 sm:$0xff]  }
  0xcb   : > { %1762 = vmatpush2.bf16.msra.mxu1 %v2821_v60  ;;  %1722 = vmatprep.subr.bf16.mxu0 %v2826_v61  ;;  %v2893_v60 = vld [vmem:[%s3304_s24 + $0x5c0] ss:$12 sps:$4 sm:$0xff]   ;;  %v2896_v61 = vld [vmem:[%s3304_s24 + $0x428] ss:$12 sps:$4 sm:$0xff]  }
  0xcc   : > { %1763 = vmatprep.subr.bf16.mxu1 %v2829_v62  ;;  %v2897_v62 = vld [vmem:[%s3304_s24 + $0x5a8] ss:$12 sps:$4 sm:$0xff]  }
  0xce   : > { %1723 = vmatpush2.bf16.msra.mxu0 %v2824_v63  ;;  %v2898_v63 = vld [vmem:[%s3304_s24 + $0x368] ss:$12 sps:$4 sm:$0xff]  }
  0xcf   : > { %1764 = vmatpush2.bf16.msra.mxu1 %v2827_v0  ;;  %1724 = vmatprep.subr.bf16.mxu0 %v2832_v1  ;;  %v2901_v0 = vld [vmem:[%s3304_s24 + $0x590] ss:$12 sps:$4 sm:$0xff]  }
  0xd0   : > { %1765 = vmatprep.subr.bf16.mxu1 %v2835_v2  ;;  %v2902_v1 = vld [vmem:[%s3304_s24 + $0x350] ss:$12 sps:$4 sm:$0xff]  }
  0xd1   : > { %v2903_v2 = vld [vmem:[%s3304_s24 + $0x4d0] ss:$12 sps:$4 sm:$0xff]  }
  0xd2   : > { %1725 = vmatpush2.bf16.msra.mxu0 %v2830_v3  ;;  %v2904_v3 = vld [vmem:[%s3304_s24 + $0x3f8] ss:$12 sps:$4 sm:$0xff]  }
  0xd3   : > { %1766 = vmatpush2.bf16.msra.mxu1 %v2833_v4  ;;  %1726 = vmatprep.subr.bf16.mxu0 %v2838_v5  ;;  %v2905_v4 = vld [vmem:[%s3304_s24 + $0x578] ss:$12 sps:$4 sm:$0xff]  }
  0xd4   : > { %1767 = vmatprep.subr.bf16.mxu1 %v2841_v6  ;;  %v2906_v5 = vld [vmem:[%s3304_s24 + $0x338] ss:$12 sps:$4 sm:$0xff]  }
  0xd5   : > { %v2907_v6 = vld [vmem:[%s3304_s24 + $0x4b8] ss:$12 sps:$4 sm:$0xff]  }
  0xd6   : > { %1727 = vmatpush2.bf16.msra.mxu0 %v2836_v9  ;;  %v2908_v9 = vld [vmem:[%s3304_s24 + $0x3e0] ss:$12 sps:$4 sm:$0xff]  }
  0xd7   : > { %1768 = vmatpush2.bf16.msra.mxu1 %v2839_v10  ;;  %1728 = vmatprep.subr.bf16.mxu0 %v2844_v11  ;;  %v2909_v10 = vld [vmem:[%s3304_s24 + $0x560] ss:$12 sps:$4 sm:$0xff]  }
  0xd8   : > { %1769 = vmatprep.subr.bf16.mxu1 %v2847_v12  ;;  %v2910_v11 = vld [vmem:[%s3304_s24 + $0x320] ss:$12 sps:$4 sm:$0xff]  }
  0xd9   : > { %v2911_v12 = vld [vmem:[%s3304_s24 + $0x4a0] ss:$12 sps:$4 sm:$0xff]  }
  0xda   : > { %1729 = vmatpush2.bf16.msra.mxu0 %v2842_v13  ;;  %v2912_v13 = vld [vmem:[%s3304_s24 + $0x3c8] ss:$12 sps:$4 sm:$0xff]  }
  0xdb   : > { %1770 = vmatpush2.bf16.msra.mxu1 %v2845_v14  ;;  %2447 = vmatprep.subr.bf16.mxu0 %v2852_v15  ;;  %v2913_v14 = vld [vmem:[%s3304_s24 + $0x548] ss:$12 sps:$4 sm:$0xff]  }
  0xdc   : > { %2469 = vmatprep.subr.bf16.mxu1 %v2853_v16  ;;  %v2914_v15 = vld [vmem:[%s3304_s24 + $0x308] ss:$12 sps:$4 sm:$0xff]  }
  0xdd   : > { %1731 = vmatmul.mubr.bf16.vlgmr.msra.gmra.mxu0 %v3497_v18  ;;  %v2915_v16 = vld [vmem:[%s3304_s24 + $0x488] ss:$12 sps:$4 sm:$0xff]  }
  0xde   : > { %1772 = vmatmul.mubr.bf16.vlgmr.msra.gmra.mxu1 %v3501_v19  ;;  %2448 = vmatpush3.bf16.msra.mxu0 %v2854_v17 }
  0xdf   : > { %2470 = vmatpush3.bf16.msra.mxu1 %v2855_v20  ;;  %2449 = vmatprep.subr.bf16.mxu0 %v2856_v21 }
  0xe0   : > { %2471 = vmatprep.subr.bf16.mxu1 %v2857_v22  ;;  %1812 = vmatprep.mubr.bf16.mxu0 %v3381_v48  ;;  %v2868_v48 = vld [vmem:[%s3304_s24 + $0x110] ss:$12 sps:$4 sm:$0xff]  }
  0xe1   : > { %1852 = vmatprep.mubr.bf16.mxu1 %v3386_v52  ;;  %v2869_v52 = vld [vmem:[%s3304_s24 + $0x290] ss:$12 sps:$4 sm:$0xff]  }
  0xe2   : > { %2450 = vmatpush3.bf16.msra.mxu0 %v2858_v23 }
  0xe3   : > { %2472 = vmatpush3.bf16.msra.mxu1 %v2859_v24  ;;  %2451 = vmatprep.subr.bf16.mxu0 %v2860_v25 }
  0xe4   : > { %2473 = vmatprep.subr.bf16.mxu1 %v2861_v26 }
  0xe6   : > { %2452 = vmatpush3.bf16.msra.mxu0 %v2862_v27 }
  0xe7   : > { %2474 = vmatpush3.bf16.msra.mxu1 %v2863_v28  ;;  %2453 = vmatprep.subr.bf16.mxu0 %v2864_v29 }
  0xe8   : > { %2475 = vmatprep.subr.bf16.mxu1 %v2865_v30 }
  0xea   : > { %2454 = vmatpush3.bf16.msra.mxu0 %v2866_v31 }
  0xeb   : > { %2476 = vmatpush3.bf16.msra.mxu1 %v2867_v32  ;;  %2455 = vmatprep.subr.bf16.mxu0 %v2868_v48  ;;  %v301_v32 = vld [vmem:[%s3328_s11] sm:$0xff] }
  0xec   : > { %2477 = vmatprep.subr.bf16.mxu1 %v2869_v52 }
  0xee   : > { %2456 = vmatpush3.bf16.msra.mxu0 %v2870_v33  ;;  %v302_v33 = vld [vmem:[%s3328_s11 + $0x8] sm:$0xff] }
  0xef   : > { %2478 = vmatpush3.bf16.msra.mxu1 %v2871_v34  ;;  %2457 = vmatprep.subr.bf16.mxu0 %v2872_v35 }
  0xf0   : > { %2479 = vmatprep.subr.bf16.mxu1 %v2873_v36 }
  0xf2   : > { %2458 = vmatpush3.bf16.msra.mxu0 %v2874_v39 }
  0xf3   : > { %2480 = vmatpush3.bf16.msra.mxu1 %v2875_v40  ;;  %2459 = vmatprep.subr.bf16.mxu0 %v2876_v41 }
  0xf4   : > { %2481 = vmatprep.subr.bf16.mxu1 %v2877_v42 }
  0xf6   : > { %2460 = vmatpush3.bf16.msra.mxu0 %v2878_v43 }
  0xf7   : > { %2482 = vmatpush3.bf16.msra.mxu1 %v2879_v44  ;;  %2461 = vmatprep.subr.bf16.mxu0 %v2880_v45 }
  0xf8   : > { %2483 = vmatprep.subr.bf16.mxu1 %v2881_v46 }
  0xfa   : > { %2462 = vmatpush3.bf16.msra.mxu0 %v2882_v47 }
  0xfb   : > { %2484 = vmatpush3.bf16.msra.mxu1 %v2883_v49  ;;  %2491 = vmatprep.subr.bf16.mxu0 %v2884_v50 }
  0xfc   : > { %2513 = vmatprep.subr.bf16.mxu1 %v2885_v51 }
  0xfd   : > { %1813 = vmatmul.mubr.bf16.vlgmr.msra.gmra.mxu0 %v3408_v7  ;;  %v2894_v7 = vld [vmem:[%s3304_s24 + $0x380] ss:$12 sps:$4 sm:$0xff]  }
  0xfe   : > { %1853 = vmatmul.mubr.bf16.vlgmr.msra.gmra.mxu1 %v3410_v8  ;;  %2492 = vmatpush3.bf16.msra.mxu0 %v2886_v53  ;;  %v2895_v8 = vld [vmem:[%s3304_s24 + $0x500] ss:$12 sps:$4 sm:$0xff]  }
  0xff   : > { %2514 = vmatpush3.bf16.msra.mxu1 %v2887_v54  ;;  %2493 = vmatprep.subr.bf16.mxu0 %v2888_v55 }
 0x100   : > { %2515 = vmatprep.subr.bf16.mxu1 %v2889_v56  ;;  %1892 = vmatprep.mubr.bf16.mxu0 %v3448_v37  ;;  %v2899_v37 = vld [vmem:[%s3304_s24 + $0x4e8] ss:$12 sps:$4 sm:$0xff]  }
 0x101   : > { %1932 = vmatprep.mubr.bf16.mxu1 %v3452_v38  ;;  %v2900_v38 = vld [vmem:[%s3304_s24 + $0x410] ss:$12 sps:$4 sm:$0xff]  }
 0x102   : > { %2494 = vmatpush3.bf16.msra.mxu0 %v2890_v57 }
 0x103   : > { %2516 = vmatpush3.bf16.msra.mxu1 %v2891_v58  ;;  %2495 = vmatprep.subr.bf16.mxu0 %v2892_v59 }
 0x104   : > { %2517 = vmatprep.subr.bf16.mxu1 %v2893_v60 }
 0x106   : > { %2496 = vmatpush3.bf16.msra.mxu0 %v2894_v7 }
 0x107   : > { %2518 = vmatpush3.bf16.msra.mxu1 %v2895_v8  ;;  %2497 = vmatprep.subr.bf16.mxu0 %v2896_v61 }
 0x108   : > { %2519 = vmatprep.subr.bf16.mxu1 %v2897_v62 }
 0x10a   : > { %2498 = vmatpush3.bf16.msra.mxu0 %v2898_v63  ;;  %v303_v63 = vld [vmem:[%s3328_s11 + $0x10] sm:$0xff] }
 0x10b   : > { %2520 = vmatpush3.bf16.msra.mxu1 %v2899_v37  ;;  %2499 = vmatprep.subr.bf16.mxu0 %v2900_v38 }
 0x10c   : > { %2521 = vmatprep.subr.bf16.mxu1 %v2901_v0 }
 0x10e   : > { %2500 = vmatpush3.bf16.msra.mxu0 %v2902_v1 }
 0x10f   : > { %2522 = vmatpush3.bf16.msra.mxu1 %v2903_v2  ;;  %2501 = vmatprep.subr.bf16.mxu0 %v2904_v3 }
 0x110   : > { %2523 = vmatprep.subr.bf16.mxu1 %v2905_v4 }
 0x112   : > { %2502 = vmatpush3.bf16.msra.mxu0 %v2906_v5 }
 0x113   : > { %2524 = vmatpush3.bf16.msra.mxu1 %v2907_v6  ;;  %2503 = vmatprep.subr.bf16.mxu0 %v2908_v9 }
 0x114   : > { %2525 = vmatprep.subr.bf16.mxu1 %v2909_v10 }
 0x116   : > { %2504 = vmatpush3.bf16.msra.mxu0 %v2910_v11 }
 0x117   : > { %2526 = vmatpush3.bf16.msra.mxu1 %v2911_v12  ;;  %2505 = vmatprep.subr.bf16.mxu0 %v2912_v13 }
 0x118   : > { %2527 = vmatprep.subr.bf16.mxu1 %v2913_v14 }
 0x11a   : > { %2506 = vmatpush3.bf16.msra.mxu0 %v2914_v15 }
 0x11b   : > { %2528 = vmatpush3.bf16.msra.mxu1 %v2915_v16 }
 0x11d   : > { %1893 = vmatmul.mubr.bf16.vlgmr.msra.gmra.mxu0 %v3497_v18 }
 0x11e   : > { %1933 = vmatmul.mubr.bf16.vlgmr.msra.gmra.mxu1 %v3501_v19 }
 0x15d   : > { %v1650_v17 = vpop.f32.mrf.mxu0 }
 0x15e   : > { %v1691_v20 = vpop.f32.mrf.mxu1 }
 0x15f   : > { %v1652_v21 = vpop.f32.mrf.mxu0  ;;  %v1692_v27 = vadd.f32 %v1691_v20, %v1650_v17 }
 0x160   : > { %v1693_v22 = vpop.f32.mrf.mxu1 }
 0x161   : > { %v1654_v23 = vpop.f32.mrf.mxu0  ;;  %v1694_v30 = vadd.f32 %v1693_v22, %v1652_v21 }
 0x162   : > { %v1695_v24 = vpop.f32.mrf.mxu1 }
 0x163   : > { %v1655_v25 = vpop.f32.mrf.mxu0 }
 0x164   : > { %v1696_v26 = vpop.f32.mrf.mxu1 }
 0x19d   : > { %v1732_v28 = vpop.f32.mrf.mxu0 }
 0x19e   : > { %v1773_v29 = vpop.f32.mrf.mxu1  ;;  %v1733_v31 = vadd.f32 %v1732_v28, %v1692_v27 }
 0x19f   : > { %v1734_v18 = vpop.f32.mrf.mxu0 }
 0x1a0   : > { %v1775_v48 = vpop.f32.mrf.mxu1  ;;  %v1774_v19 = vadd.f32 %v1773_v29, %v1733_v31  ;;  %v1735_v52 = vadd.f32 %v1734_v18, %v1694_v30 }
 0x1a1   : > { %v1736_v34 = vpop.f32.mrf.mxu0 }
 0x1a2   : > { %v1777_v35 = vpop.f32.mrf.mxu1  ;;  %v1940_v36 = vadd.f32 %v1774_v19, %v301_v32  ;;  %v1776_v39 = vadd.f32 %v1775_v48, %v1735_v52 }
 0x1a3   : > { %v1737_v40 = vpop.f32.mrf.mxu0 }
 0x1a4   : > { %v1778_v41 = vpop.f32.mrf.mxu1  ;;  %1943 = vst [vmem:[%s3328_s11] sm:$0xff] %v1940_v36  ;;  %v1941_v42 = vadd.f32 %v1776_v39, %v302_v33 }
 0x1a6   : > { %1944 = vst [vmem:[%s3328_s11 + $0x8] sm:$0xff] %v1941_v42 }
 0x1bd   : > { %v2463_v43 = vpop.f32.mrf.mxu0 }
 0x1be   : > { %v2485_v44 = vpop.f32.mrf.mxu1 }
 0x1bf   : > { %v2464_v45 = vpop.f32.mrf.mxu0 }
 0x1c0   : > { %v2486_v46 = vpop.f32.mrf.mxu1  ;;  %v2465_v53 = vadd.f32 %v2464_v45, %v2463_v43 }
 0x1c1   : > { %v2466_v47 = vpop.f32.mrf.mxu0  ;;  %v2487_v54 = vadd.f32 %v2486_v46, %v2485_v44 }
 0x1c2   : > { %v2488_v49 = vpop.f32.mrf.mxu1 }
 0x1c3   : > { %v2467_v50 = vpop.f32.mrf.mxu0  ;;  %v1855_v59 = vadd.f32 %v2487_v54, %v2465_v53 }
 0x1c4   : > { %v2489_v51 = vpop.f32.mrf.mxu1 }
 0x1dd   : > { %v2507_v55 = vpop.f32.mrf.mxu0 }
 0x1de   : > { %v2529_v56 = vpop.f32.mrf.mxu1 }
 0x1df   : > { %v2508_v57 = vpop.f32.mrf.mxu0 }
 0x1e0   : > { %v2530_v58 = vpop.f32.mrf.mxu1  ;;  %v2509_v60 = vadd.f32 %v2508_v57, %v2507_v55 }
 0x1e1   : > { %v2510_v7 = vpop.f32.mrf.mxu0  ;;  %v2531_v62 = vadd.f32 %v2530_v58, %v2529_v56 }
 0x1e2   : > { %v2532_v8 = vpop.f32.mrf.mxu1  ;;  %v1895_v61 = vadd.f32 %v2509_v60, %v1855_v59 }
 0x1e3   : > { %v2511_v37 = vpop.f32.mrf.mxu0 }
 0x1e4   : > { %v2533_v38 = vpop.f32.mrf.mxu1  ;;  %v1935_v0 = vadd.f32 %v2531_v62, %v1895_v61  ;;  %1949 = sbr.rel (%p2439_p12) target bundleno = 558 (0x22e), region = 48 }
 0x1e6   : > { %v1942_v1 = vadd.f32 %v1935_v0, %v303_v63 }
 0x1e8   : > { %1945 = vst [vmem:[%s3328_s11 + $0x10] sm:$0xff] %v1942_v1 }
 0x1e9   : > { %v1955_v2 = vlaneseq  ;;  %v1953_v4 = vld [vmem:[%s3315_s26] ss:$4 sm:$0x7] }
 0x1ea   : > { %v1950_v10 = vld [vmem:[%s3328_s11] sm:$0xff]  ;;  %v1951_v11 = vld [vmem:[%s3328_s11 + $0x8] sm:$0xff] }
 0x1eb   : > { %v1956_v3 = vshrl.u32 %v1955_v2, 7 }
 0x1ed   : > { %v3582_v5 = vsub.s32 0, %v1956_v3  ;;  %v3584_v6 = vsub.s32 1, %v1956_v3  ;;  %v3586_v9 = vsub.s32 2, %v1956_v3 }
 0x1ef   : > { %v1958_v12 = vrot.slane %v1953_v4, %v3582_v5  ;;  %v1962_v13 = vrot.slane %v1953_v4, %v3584_v6  ;;  %v1952_v14 = vld [vmem:[%s3328_s11 + $0x10] sm:$0xff]  ;;  %v1966_v15 = vrot.slane %v1953_v4, %v3586_v9 }
 0x1f0   : > { %v2440_v4 = vld [vmem:[%s3315_s26 + $0x1] ss:$4 sm:$0x7] }
 0x1f1   : > { %v1970_v16 = vadd.f32 %v1958_v12, %v1950_v10  ;;  %v1971_v17 = vadd.f32 %v1962_v13, %v1951_v11  ;;  %v1972_v20 = vadd.f32 %v1966_v15, %v1952_v14  ;;  %v2441_v10 = vld [vmem:[%s3315_s26 + $0x2] ss:$4 sm:$0x7]  ;;  %v2037_v11 = vrot.slane %v2440_v4, %v3582_v5 }
 0x1f2   : > { %v2041_v13 = vrot.slane %v2440_v4, %v3584_v6 }
 0x1f3   : > { %v1973_v21 = vrot.slane %v1970_v16, 4  ;;  %v1979_v22 = vrot.slane %v1971_v17, 4  ;;  %v1985_v23 = vrot.slane %v1972_v20, 4 }
 0x1f5   : > { %v1974_v24 = vadd.f32 %v1973_v21, %v1970_v16  ;;  %v1980_v25 = vadd.f32 %v1979_v22, %v1971_v17  ;;  %v1986_v26 = vadd.f32 %v1985_v23, %v1972_v20  ;;  %v2062_v22 = vrot.slane %v2441_v10, %v3584_v6 }
 0x1f7   : > { %v1975_v27 = vrot.slane %v1974_v24, 2  ;;  %v1981_v28 = vrot.slane %v1980_v25, 2  ;;  %v1987_v29 = vrot.slane %v1986_v26, 2 }
 0x1f9   : > { %v1976_v30 = vadd.f32 %v1975_v27, %v1974_v24  ;;  %v1982_v31 = vadd.f32 %v1981_v28, %v1980_v25  ;;  %v1988_v32 = vadd.f32 %v1987_v29, %v1986_v26  ;;  %v2066_v25 = vrot.slane %v2441_v10, %v3586_v9 }
 0x1fb   : > { %v1977_v18 = vrot.slane %v1976_v30, 1  ;;  %v1983_v48 = vrot.slane %v1982_v31, 1  ;;  %v1989_v19 = vrot.slane %v1988_v32, 1 }
 0x1fd   : > { %v1978_v52 = vadd.f32 %v1977_v18, %v1976_v30  ;;  %v1984_v33 = vadd.f32 %v1983_v48, %v1982_v31  ;;  %v1990_v34 = vadd.f32 %v1989_v19, %v1988_v32 }
 0x1ff   : > { %v1992_v35 = vmul.f32 0.125, %v1978_v52  ;;  %v1993_v36 = vmul.f32 0.125, %v1984_v33  ;;  %v1994_v39 = vmul.f32 0.125, %v1990_v34 }
 0x201   : > { %v1995_v40 = vsub.f32 %v1970_v16, %v1992_v35  ;;  %v1996_v41 = vsub.f32 %v1971_v17, %v1993_v36  ;;  %v1997_v42 = vsub.f32 %v1972_v20, %v1994_v39  ;;  %v2058_v16 = vrot.slane %v2441_v10, %v3582_v5 }
 0x202   : > { %v2045_v17 = vrot.slane %v2440_v4, %v3586_v9 }
 0x203   : > { %v1998_v43 = vmul.f32 %v1995_v40, %v1995_v40  ;;  %v1999_v44 = vmul.f32 %v1996_v41, %v1996_v41  ;;  %v2000_v45 = vmul.f32 %v1997_v42, %v1997_v42 }
 0x205   : > { %v2001_v46 = vrot.slane %v1998_v43, 4  ;;  %v2007_v47 = vrot.slane %v1999_v44, 4  ;;  %v2013_v49 = vrot.slane %v2000_v45, 4 }
 0x207   : > { %v2002_v50 = vadd.f32 %v2001_v46, %v1998_v43  ;;  %v2008_v51 = vadd.f32 %v2007_v47, %v1999_v44  ;;  %v2014_v53 = vadd.f32 %v2013_v49, %v2000_v45 }
 0x209   : > { %v2003_v54 = vrot.slane %v2002_v50, 2  ;;  %v2009_v55 = vrot.slane %v2008_v51, 2  ;;  %v2015_v56 = vrot.slane %v2014_v53, 2 }
 0x20b   : > { %v2004_v57 = vadd.f32 %v2003_v54, %v2002_v50  ;;  %v2010_v58 = vadd.f32 %v2009_v55, %v2008_v51  ;;  %v2016_v59 = vadd.f32 %v2015_v56, %v2014_v53 }
 0x20d   : > { %v2005_v60 = vrot.slane %v2004_v57, 1  ;;  %v2011_v7 = vrot.slane %v2010_v58, 1  ;;  %v2017_v8 = vrot.slane %v2016_v59, 1 }
 0x20f   : > { %v2006_v61 = vadd.f32 %v2005_v60, %v2004_v57  ;;  %v2012_v62 = vadd.f32 %v2011_v7, %v2010_v58  ;;  %v2018_v63 = vadd.f32 %v2017_v8, %v2016_v59 }
 0x211   : > { %v2019_v37 = vmul.f32 0.125, %v2006_v61  ;;  %v2020_v38 = vmul.f32 0.125, %v2012_v62  ;;  %v2021_v0 = vmul.f32 0.125, %v2018_v63 }
 0x213   : > { %v2022_v1 = vadd.f32 1e-05, %v2019_v37  ;;  %v2023_v2 = vadd.f32 1e-05, %v2020_v38  ;;  %v2024_v3 = vadd.f32 1e-05, %v2021_v0 }
 0x215   : > { %2916 = vrsqrt.f32 %v2022_v1 }
 0x216   : > { %2918 = vrsqrt.f32 %v2023_v2 }
 0x217   : > { %2920 = vrsqrt.f32 %v2024_v3 }
 0x222   : > { %v2917_v12 = vpop.eup %2916 }
 0x223   : > { %v2919_v14 = vpop.eup %2918  ;;  %v2028_v15 = vmul.f32 %v2917_v12, %v1995_v40 }
 0x224   : > { %v2921_v20 = vpop.eup %2920  ;;  %v2029_v21 = vmul.f32 %v2919_v14, %v1996_v41 }
 0x225   : > { %v2049_v23 = vmul.f32 %v2037_v11, %v2028_v15  ;;  %v2030_v24 = vmul.f32 %v2921_v20, %v1997_v42 }
 0x226   : > { %v2050_v26 = vmul.f32 %v2041_v13, %v2029_v21 }
 0x227   : > { %v2070_v27 = vadd.f32 %v2058_v16, %v2049_v23  ;;  %v2051_v28 = vmul.f32 %v2045_v17, %v2030_v24 }
 0x228   : > { %v2071_v29 = vadd.f32 %v2062_v22, %v2050_v26 }
 0x229   : > { %v2073_v30 = vmax.f32 %v2070_v27, 0.0  ;;  %v2072_v31 = vadd.f32 %v2066_v25, %v2051_v28 }
 0x22a   : > { %v2074_v32 = vmax.f32 %v2071_v29, 0.0 }
 0x22b   : > { %2076 = vst [vmem:[%s3328_s11] sm:$0xff] %v2073_v30  ;;  %v2075_v5 = vmax.f32 %v2072_v31, 0.0 }
 0x22c   : > { %2077 = vst [vmem:[%s3328_s11 + $0x8] sm:$0xff] %v2074_v32 }
 0x22d   : > { %2078 = vst [vmem:[%s3328_s11 + $0x10] sm:$0xff] %v2075_v5 }
 0x22e PF: > { %s3686_s18 = sld [smem:[#allocation11_spill]]  ;;  %s2096_s15 = sshll.u32 %s3328_s11, 4  ;;  %s2097_s15 = int_to_ptr.vmem [resolvable:$true] %s2096_s15 }
 0x22f   : > { %s3687_s27 = sld [smem:[#allocation16_spill]]  ;;  %s2080_s1 = scalar_lea.sflag [#allocation4], %s3311_s21 }
 0x230   : > { %s2978_s23 = scalar_lea.vmem %s2097_s15, 384  ;;  %s3110_s26 = smov [#allocation7]  }
 0x231   : > { %p2979_p5 = scmp.ne.s32.totalorder %s2097_s15, %s2978_s23  ;;  %s2982_s5 = sshll.u32 %s3110_s26, 4  ;;  %s2983_s5 = int_to_ptr.vmem [resolvable:$false] %s2982_s5 }
 0x232   : > { %s2984_s30 = scalar_lea.vmem %s2983_s5, 768  ;;  %p2985_p13 = scmp.lt.s32.totalorder %s2097_s15, %s2983_s5 }
 0x233   : > { %p2980_p10 = pnand %p2979_p5, %p3265_p8  ;;  %p2986_p1 = scmp.lt.s32.totalorder %s2984_s30, %s2978_s23 }
 0x234   : > { %s2446_s25 = smul.u32 384, %s3686_s18 }
 0x235   : > { %p2981_p11 = pneg %p2980_p10  ;;  %p2987_p4 = por %p2986_p1, %p2985_p13 }
 0x236   : > { %s2094_s24 = scalar_lea.hbm %s3687_s27, %s2446_s25 }
 0x237   : > { %p2988_p0 = pnand %p2987_p4, %p2981_p11 }
 0x239   : > { %2991 = shalt.err (!%p2988_p0)
}
 0x23a   : > { %s2992_s6 = scalar_lea.hbm %s2094_s24, 384  ;;  %s2996_s8 = scalar_lea.hbm %s3687_s27, 768 }
 0x23b   : > { %p2993_p3 = scmp.ne.s32.totalorder %s2094_s24, %s2992_s6  ;;  %p2997_p6 = scmp.lt.s32.totalorder %s2094_s24, %s3687_s27 }
 0x23c   : > { %p2998_p12 = scmp.lt.s32.totalorder %s2996_s8, %s2992_s6 }
 0x23d   : > { %p2994_p2 = pnand %p2993_p3, %p3265_p8 }
 0x23e   : > { %p2999_p5 = por %p2998_p12, %p2997_p6 }
 0x23f   : > { %p2995_p7 = pneg %p2994_p2 }
 0x241   : > { %p3000_p10 = pnand %p2999_p5, %p2995_p7 }
 0x243   : > { %3003 = shalt.err (!%p3000_p10)
}
 0x244   : > { %2545 = dma.vmem_to_hbm [thread:$0]  (%p3265_p8), %s2097_s15, 384, %s2094_s24, %s2080_s1  }
 0x245 PF: > { %p2559_p11 = scmp.ge.s32.totalorder %s3102_s22, 2  ;;  %s2108_s18 = sand.u32 1, %s3062_s12  }
 0x246   : > { %s2109_s25 = scalar_lea.sflag [#allocation4], %s2108_s18 }
 0x247   : > { %p2555_p13 = pnand %p2559_p11, %p3281_p9 }
 0x249   : > { %p2556_p1 = pneg %p2555_p13 }
 0x24b   : > { %3057 = dma.done.wait (%p2556_p1), %s2109_s25, 384  }
 0x24c   : > { %3059 = vsyncadd (%p2556_p1), %s2109_s25, 4294966912  ;;  %s22_s22 = sadd.s32 1, %s3102_s22   ;;  %s3688_s19 = sld [smem:[#allocation12_spill]] }
 0x24d   : > { %p19_p4 = scmp.ge.s32.totalorder %s22_s22, 10   ;;  %s3689_s9 = sld [smem:[#allocation13_spill]] }
 0x24e   : > { %s3690_s21 = sld [smem:[#allocation14_spill]]  ;;  %s3691_s12 = smov %s3066_s13 }
 0x24f   : > { %s3692_s13 = smov %s3070_s14  ;;  %s3693_s14 = smov %s3270_s10 }
 0x250   : > { %s3694_s15 = smov %s3078_s16  ;;  %s3695_s16 = smov %s3082_s17 }
 0x251   : > { %s3696_s17 = smov %s3275_s28  ;;  %s3697_s18 = smov %s3094_s20 }
 0x252   :  { %21 = sbr.rel (!%p19_p4) target bundleno = 14 (0xe), region = 103 }
 0x253   : > { %s3698_s20 = smov %s3689_s9 }
 0x257   :  { %2114 = vsyncpa [#allocation3], 1 }
 0x258   :  { %2116 = vsyncpa [#allocation3 + $0x1], 1 }
 0x259   :  { %2117 = vsyncpa [#allocation6], 1 }
 0x25a   :  { %2119 = vsyncpa [#allocation6 + $0x1], 1 }
 0x25b   :  { %2120 = vsyncpa [#allocation4], 1 }
 0x25c   :  { %2122 = vsyncpa [#allocation4 + $0x1], 1 }

</bundles_post_ra>
